<compile_context>
chip_gen: v7x
topology: tpu7x:2x2x1
jax: 0.10.0
libtpu: 0.0.40
codegen_flags: <defaults>
</compile_context>

<pallas_src>
import functools
import math

import jax
import jax.numpy as jnp
from jax import lax
from jax.experimental import pallas as pl
from jax.experimental.pallas import tpu as pltpu

_INV_SQRT2 = 1.0 / math.sqrt(2.0)

# Activation-tile VMEM budget (double-buffered input + output blocks).  Chosen to be
# safe on v7x (64 MiB physical VMEM) while leaving headroom for weights + compiler
# scratch; v5e/v6e have 128 MiB physical so this never constrains them more.
_ACT_VMEM_BUDGET = 20 * 1024 * 1024
# DMA efficiency saturates well below this; also bounds in-kernel unrolling.
_MAX_TL = 4096
# Keep the live f32 working set (x, h, y for one chunk) around half the 256 KiB vreg file.
_VREG_LIVE_BUDGET = 128 * 1024


def _round_up(x, m):
    return ((x + m - 1) // m) * m


def _pick_tl(l_pad, batch, c_in, c_out, itemsize):
    """Largest lane tile (multiple of 128 dividing l_pad) whose double-buffered
    in+out blocks fit the VMEM budget, capped at _MAX_TL, preferring >= 2 total
    grid steps (v7x has 2 TensorCores)."""
    n = l_pad // 128
    per_lane = 2 * (c_in + c_out) * itemsize          # double-buffered in+out bytes / lane
    max_units = max(min(_ACT_VMEM_BUDGET // (per_lane * 128), _MAX_TL // 128), 1)
    best = 1
    for d in range(1, n + 1):
        if n % d == 0 and d <= max_units:
            best = d
    # Keep at least 2 parallel grid steps when possible (v7x megacore).
    if batch * (n // best) < 2 and best > 1:
        for d in range(best - 1, 0, -1):
            if n % d == 0:
                best = d
                break
    return best * 128


def _pick_chunk(tl, c_in, hidden, c_out):
    """Lane chunk processed per inner iteration so the live f32 tiles stay in vregs."""
    live_per_lane = (c_in + hidden + c_out) * 4        # x, h, y in f32
    max_units = max(_VREG_LIVE_BUDGET // (live_per_lane * 128), 1)
    m = tl // 128
    best = 1
    for d in range(1, m + 1):
        if m % d == 0 and d <= max_units:
            best = d
    return best * 128


def _ffn_ncl_kernel(x_ref, w1_ref, b1_ref, w2_ref, b2_ref, o_ref, *, chunk, num_chunks):
    # x_ref : (C_in, TL)   input column block (channels x positions)
    # w1_ref: (H, C_in)    fc1 weight, PyTorch (out, in) layout
    # b1_ref: (H, 1)       fc1 bias as a column vector (f32)
    # w2_ref: (C_out, H)   fc2 weight, PyTorch (out, in) layout
    # b2_ref: (C_out, 1)   fc2 bias as a column vector (f32)
    # o_ref : (C_out, TL)  output column block
    w1 = w1_ref[...]
    w2 = w2_ref[...]
    # Hoist bias broadcasts out of the chunk loop (JAX does not CSE broadcast_in_dim).
    b1 = jnp.broadcast_to(b1_ref[...], (w1.shape[0], chunk))
    b2 = jnp.broadcast_to(b2_ref[...], (w2.shape[0], chunk))

    # Static (fully unrolled) chunk loop: static 128-aligned lane slices of a VMEM ref
    # are zero-cost views; chunking bounds the live f32 working set so no vreg spills.
    for c in range(num_chunks):
        lo = c * chunk
        x = x_ref[:, lo:lo + chunk]
        h = jnp.dot(w1, x, preferred_element_type=jnp.float32) + b1
        # Exact (erf) GELU — matches torch.nn.functional.gelu default.
        h = 0.5 * h * (1.0 + lax.erf(h * _INV_SQRT2))
        y = jnp.dot(w2, h.astype(w2.dtype), preferred_element_type=jnp.float32) + b2
        o_ref[:, lo:lo + chunk] = y.astype(o_ref.dtype)


@jax.jit
def decoder_layer_forward(x_ncl, w1, b1, w2, b2):
    """x_ncl: (B, latent_dim, L). Returns (B, data_seq, L). Computed in native NCL layout.

    dtype-preserving: f32 in -> f32 out (matches the PyTorch module); pass bf16 arrays
    for bf16 I/O (accumulation stays f32, HBM traffic halves)."""
    B, C_in, L = x_ncl.shape
    H = w1.shape[0]       # data_seq // 2
    C_out = w2.shape[0]   # data_seq

    # Lane-dense padding: make the length (lane) axis a multiple of 128 so stores are
    # unmasked full-lane vst and DMAs are unpadded; padded columns are sliced off below.
    L_pad = _round_up(L, 128)
    if L_pad != L:
        x_ncl = jnp.pad(x_ncl, ((0, 0), (0, 0), (0, L_pad - L)))

    itemsize = jnp.dtype(x_ncl.dtype).itemsize
    w_itemsize = jnp.dtype(w1.dtype).itemsize
    TL = _pick_tl(L_pad, B, C_in, C_out, itemsize)
    chunk = _pick_chunk(TL, C_in, H, C_out)
    num_chunks = TL // chunk

    b1c = b1.reshape(H, 1).astype(jnp.float32)
    b2c = b2.reshape(C_out, 1).astype(jnp.float32)

    # Advisory cost estimate (this kernel is memory-bound: ~4 flop/byte).
    cost = pl.CostEstimate(
        flops=int(2 * B * L_pad * H * (C_in + C_out)),
        transcendentals=int(B * L_pad * H),
        bytes_accessed=int(itemsize * B * L_pad * (C_in + C_out)
                           + w_itemsize * (H * C_in + C_out * H)
                           + 4 * (H + C_out)),
    )

    # Scoped-VMEM limit: double-buffered activation tiles + weights with ~2x headroom,
    # clamped to [16 MiB, 28 MiB] — raises v5e's 16 MiB default scoped limit when needed,
    # stays well under v7x's 64 MiB physical VMEM.
    act_bytes = 2 * (C_in + C_out) * TL * itemsize
    w_bytes = 2 * (H * C_in + C_out * H) * w_itemsize + 2 * (H + C_out) * 4
    vmem_limit = int(min(max(2 * (act_bytes + w_bytes) + (2 << 20), 16 << 20), 28 << 20))

    kernel = functools.partial(_ffn_ncl_kernel, chunk=chunk, num_chunks=num_chunks)

    out = pl.pallas_call(
        kernel,
        out_shape=jax.ShapeDtypeStruct((B, C_out, L_pad), x_ncl.dtype),
        grid_spec=pltpu.PrefetchScalarGridSpec(
            num_scalar_prefetch=0,
            grid=(B, L_pad // TL),
            in_specs=[
                # batch dim squeezed out of the kernel view; (C_in, TL) block.
                pl.BlockSpec((None, C_in, TL), lambda b, l: (b, 0, l)),
                # weights / biases: constant block index -> stay resident in VMEM.
                pl.BlockSpec((H, C_in), lambda b, l: (0, 0)),
                pl.BlockSpec((H, 1), lambda b, l: (0, 0)),
                pl.BlockSpec((C_out, H), lambda b, l: (0, 0)),
                pl.BlockSpec((C_out, 1), lambda b, l: (0, 0)),
            ],
            out_specs=pl.BlockSpec((None, C_out, TL), lambda b, l: (b, 0, l)),
        ),
        compiler_params=pltpu.CompilerParams(
            # Both grid axes are independent -> megacore sharding on v7x.
            dimension_semantics=("parallel", "parallel"),
            vmem_limit_bytes=vmem_limit,
        ),
        cost_estimate=cost,
    )(x_ncl, w1, b1c, w2, b2c)

    if L_pad != L:
        out = out[:, :, :L]
    return out


def init_params(key, latent_dim, data_seq, dtype=jnp.float32):
    """Deterministic init mimicking PyTorch Conv1d default; weights kept in
    PyTorch-native (out_channels, in_channels) layout (kernel_size=1 squeezed)."""
    hidden = data_seq // 2
    k1, k2, k3, k4 = jax.random.split(key, 4)

    bound1 = 1.0 / math.sqrt(latent_dim)          # fan_in = latent_dim * 1
    w1 = jax.random.uniform(k1, (hidden, latent_dim), dtype, -bound1, bound1)
    b1 = jax.random.uniform(k2, (hidden,), dtype, -bound1, bound1)

    bound2 = 1.0 / math.sqrt(hidden)
    w2 = jax.random.uniform(k3, (data_seq, hidden), dtype, -bound2, bound2)
    b2 = jax.random.uniform(k4, (data_seq,), dtype, -bound2, bound2)
    return w1, b1, w2, b2


def _reference(x_ncl, w1, b1, w2, b2):
    """Pure-JAX reference matching the PyTorch forward (eval mode), NCL layout."""
    h = jnp.einsum("hc,bcl->bhl", w1, x_ncl) + b1[None, :, None]
    h = 0.5 * h * (1.0 + lax.erf(h * _INV_SQRT2))     # exact GELU
    y = jnp.einsum("oh,bhl->bol", w2, h) + b2[None, :, None]
    return y


if __name__ == "__main__":
    key = jax.random.PRNGKey(0)
    kx1, kx2, kx3, kp1, kp2 = jax.random.split(key, 5)

    # Config matching the module spec: latent_dim=32, data_seq=16 (H=8, C_out=16).
    cfg = {"latent_dim": 32, "data_seq": 16, "dropout": 0.1}
    w1, b1, w2, b2 = init_params(kp1, cfg["latent_dim"], cfg["data_seq"])

    # Case 1: short sequence (L=16) -> padded to a lane-dense 128 block, sliced back.
    x1 = jax.random.normal(kx1, (2, cfg["latent_dim"], 16), jnp.float32)
    out1 = decoder_layer_forward(x1, w1, b1, w2, b2)
    jax.block_until_ready(out1)
    ref1 = _reference(x1, w1, b1, w2, b2)
    assert out1.shape == (2, cfg["data_seq"], 16), out1.shape
    assert jnp.allclose(out1, ref1, atol=1e-5, rtol=1e-5), float(jnp.max(jnp.abs(out1 - ref1)))

    # Case 2: L=384 -> budget-driven picker takes one 384-lane tile per batch, grid=(2,1).
    x2 = jax.random.normal(kx2, (2, cfg["latent_dim"], 384), jnp.float32)
    out2 = decoder_layer_forward(x2, w1, b1, w2, b2)
    jax.block_until_ready(out2)
    ref2 = _reference(x2, w1, b1, w2, b2)
    assert out2.shape == (2, cfg["data_seq"], 384), out2.shape
    assert jnp.allclose(out2, ref2, atol=1e-5, rtol=1e-5), float(jnp.max(jnp.abs(out2 - ref2)))

    # Case 3: wider channels (latent_dim=256, data_seq=512) -> exercises the in-kernel
    # lane-chunk loop (chunk < TL) that bounds vreg pressure while keeping a large DMA.
    cfg3 = {"latent_dim": 256, "data_seq": 512, "dropout": 0.1}
    w1w, b1w, w2w, b2w = init_params(kp2, cfg3["latent_dim"], cfg3["data_seq"])
    x3 = jax.random.normal(kx3, (2, cfg3["latent_dim"], 512), jnp.float32)
    out3 = decoder_layer_forward(x3, w1w, b1w, w2w, b2w)
    jax.block_until_ready(out3)
    ref3 = _reference(x3, w1w, b1w, w2w, b2w)
    assert out3.shape == (2, cfg3["data_seq"], 512), out3.shape
    assert jnp.allclose(out3, ref3, atol=1e-4, rtol=1e-4), float(jnp.max(jnp.abs(out3 - ref3)))

    # Case 4: bf16 I/O (halves HBM bytes on this memory-bound kernel), f32 accumulation.
    x4 = x2.astype(jnp.bfloat16)
    out4 = decoder_layer_forward(x4, w1.astype(jnp.bfloat16), b1,
                                 w2.astype(jnp.bfloat16), b2)
    jax.block_until_ready(out4)
    assert out4.dtype == jnp.bfloat16 and out4.shape == (2, cfg["data_seq"], 384)
    err = float(jnp.max(jnp.abs(out4.astype(jnp.float32) - ref2)))
    assert err < 1e-1, err

    print("KERNEL_OK")
</pallas_src>

<mosaic_0001>
module attributes {stable_mosaic.version = 11 : i64} {
  func.func @_ffn_ncl_kernel(%arg0: i32, %arg1: i32, %arg2: memref<1x32x128xf32, #tpu.memory_space<vmem>>, %arg3: memref<8x32xf32, #tpu.memory_space<vmem>>, %arg4: memref<8x1xf32, #tpu.memory_space<vmem>>, %arg5: memref<16x8xf32, #tpu.memory_space<vmem>>, %arg6: memref<16x1xf32, #tpu.memory_space<vmem>>, %arg7: memref<1x16x128xf32, #tpu.memory_space<vmem>>) attributes {dimension_semantics = [#tpu.dimension_semantics<parallel>, #tpu.dimension_semantics<parallel>], iteration_bounds = array<i64: 2, 1>, scalar_prefetch = 0 : i64, scratch_operands = 0 : i64, tpu.core_type = #tpu.core_type<tc>, window_params = [{transform_indices = @transform_0, window_bounds = array<i64: 1, 32, 128>}, {pipeline_mode = #tpu.pipeline_mode<synchronous>, transform_indices = @transform_1, window_bounds = array<i64: 8, 32>}, {pipeline_mode = #tpu.pipeline_mode<synchronous>, transform_indices = @transform_2, window_bounds = array<i64: 8, 1>}, {pipeline_mode = #tpu.pipeline_mode<synchronous>, transform_indices = @transform_3, window_bounds = array<i64: 16, 8>}, {pipeline_mode = #tpu.pipeline_mode<synchronous>, transform_indices = @transform_4, window_bounds = array<i64: 16, 1>}, {transform_indices = @transform_5, window_bounds = array<i64: 1, 16, 128>}]} {
    %c0 = arith.constant 0 : index
    %c0_0 = arith.constant 0 : index
    %0 = vector.load %arg3[%c0, %c0_0] : memref<8x32xf32, #tpu.memory_space<vmem>>, vector<8x32xf32>
    %c0_1 = arith.constant 0 : index
    %c0_2 = arith.constant 0 : index
    %1 = vector.load %arg5[%c0_1, %c0_2] : memref<16x8xf32, #tpu.memory_space<vmem>>, vector<16x8xf32>
    %c0_3 = arith.constant 0 : index
    %c0_4 = arith.constant 0 : index
    %2 = vector.load %arg4[%c0_3, %c0_4] : memref<8x1xf32, #tpu.memory_space<vmem>>, vector<8x1xf32>
    %3 = vector.shape_cast %2 : vector<8x1xf32> to vector<8x1xf32>
    %4 = vector.broadcast %3 : vector<8x1xf32> to vector<8x128xf32>
    %c0_5 = arith.constant 0 : index
    %c0_6 = arith.constant 0 : index
    %5 = vector.load %arg6[%c0_5, %c0_6] : memref<16x1xf32, #tpu.memory_space<vmem>>, vector<16x1xf32>
    %6 = vector.shape_cast %5 : vector<16x1xf32> to vector<16x1xf32>
    %7 = vector.broadcast %6 : vector<16x1xf32> to vector<16x128xf32>
    %c0_7 = arith.constant 0 : index
    %c0_8 = arith.constant 0 : index
    %c0_9 = arith.constant 0 : index
    %8 = vector.load %arg2[%c0_7, %c0_8, %c0_9] : memref<1x32x128xf32, #tpu.memory_space<vmem>>, vector<1x32x128xf32>
    %9 = vector.shape_cast %8 : vector<1x32x128xf32> to vector<32x128xf32>
    %cst = arith.constant dense<0.000000e+00> : vector<8x128xf32>
    %10 = tpu.matmul %0, %9, %cst {dimension_numbers = #tpu.dot_dimension_numbers<[1], [0], [0], [1], [0, 0, 1, 1], [], []>} : vector<8x32xf32>, vector<32x128xf32>, vector<8x128xf32> -> vector<8x128xf32>
    %11 = arith.addf %10, %4 : vector<8x128xf32>
    %cst_10 = arith.constant 5.000000e-01 : f32
    %12 = vector.broadcast %cst_10 : f32 to vector<8x128xf32>
    %13 = arith.mulf %12, %11 : vector<8x128xf32>
    %cst_11 = arith.constant 0.707106769 : f32
    %14 = vector.broadcast %cst_11 : f32 to vector<8x128xf32>
    %15 = arith.mulf %11, %14 : vector<8x128xf32>
    %16 = math.erf %15 : vector<8x128xf32>
    %cst_12 = arith.constant 1.000000e+00 : f32
    %17 = vector.broadcast %cst_12 : f32 to vector<8x128xf32>
    %18 = arith.addf %17, %16 : vector<8x128xf32>
    %19 = arith.mulf %13, %18 : vector<8x128xf32>
    %cst_13 = arith.constant dense<0.000000e+00> : vector<16x128xf32>
    %20 = tpu.matmul %1, %19, %cst_13 {dimension_numbers = #tpu.dot_dimension_numbers<[1], [0], [0], [1], [0, 0, 1, 1], [], []>} : vector<16x8xf32>, vector<8x128xf32>, vector<16x128xf32> -> vector<16x128xf32>
    %21 = arith.addf %20, %7 : vector<16x128xf32>
    %c0_14 = arith.constant 0 : index
    %c0_15 = arith.constant 0 : index
    %c0_16 = arith.constant 0 : index
    %22 = vector.load %arg7[%c0_14, %c0_15, %c0_16] : memref<1x16x128xf32, #tpu.memory_space<vmem>>, vector<1x16x128xf32>
    %23 = vector.shape_cast %22 : vector<1x16x128xf32> to vector<16x128xf32>
    %24 = vector.shape_cast %21 : vector<16x128xf32> to vector<1x16x128xf32>
    tpu.vector_store %arg7[%c0_14, %c0_15, %c0_16], %24 {strides = array<i32>} : memref<1x16x128xf32, #tpu.memory_space<vmem>>, vector<1x16x128xf32>,
    return
  }
  func.func @transform_0(%arg0: i32, %arg1: i32) -> (i32, i32, i32) {
    %c0_i32 = arith.constant 0 : i32
    %c0_i32_0 = arith.constant 0 : i32
    return %arg0, %c0_i32, %arg1 : i32, i32, i32
  }
  func.func @transform_1(%arg0: i32, %arg1: i32) -> (i32, i32) {
    %c0_i32 = arith.constant 0 : i32
    %c0_i32_0 = arith.constant 0 : i32
    %c0_i32_1 = arith.constant 0 : i32
    return %c0_i32, %c0_i32_0 : i32, i32
  }
  func.func @transform_2(%arg0: i32, %arg1: i32) -> (i32, i32) {
    %c0_i32 = arith.constant 0 : i32
    %c0_i32_0 = arith.constant 0 : i32
    %c0_i32_1 = arith.constant 0 : i32
    return %c0_i32, %c0_i32_0 : i32, i32
  }
  func.func @transform_3(%arg0: i32, %arg1: i32) -> (i32, i32) {
    %c0_i32 = arith.constant 0 : i32
    %c0_i32_0 = arith.constant 0 : i32
    %c0_i32_1 = arith.constant 0 : i32
    return %c0_i32, %c0_i32_0 : i32, i32
  }
  func.func @transform_4(%arg0: i32, %arg1: i32) -> (i32, i32) {
    %c0_i32 = arith.constant 0 : i32
    %c0_i32_0 = arith.constant 0 : i32
    %c0_i32_1 = arith.constant 0 : i32
    return %c0_i32, %c0_i32_0 : i32, i32
  }
  func.func @transform_5(%arg0: i32, %arg1: i32) -> (i32, i32, i32) {
    %c0_i32 = arith.constant 0 : i32
    %c0_i32_0 = arith.constant 0 : i32
    return %arg0, %c0_i32, %arg1 : i32, i32, i32
  }
}

</mosaic_0001>

<bundles_post_ra>
// kernel: decoder_layer_forward.1
= control target key start
LH: loop header
LB: loop body
LE: loop exit
PB: predicated region body
PF: predicated region fallthrough
CT: control target
= control target key end

     0   :  { %10 = vsyncpa [#allocation3], 0  ;;  %s894_s0 = inlined_call_operand.vmem [shape: f32[2,32,128], index: 0, kind: input, shape index: {}]   ;;  %s895_s1 = inlined_call_operand.vmem [shape: f32[8,32], index: 1, kind: input, shape index: {}]   ;;  %s896_s2 = inlined_call_operand.vmem [shape: f32[8,1], index: 2, kind: input, shape index: {}]   ;;  %s897_s3 = inlined_call_operand.vmem [shape: f32[16,8], index: 3, kind: input, shape index: {}]   ;;  %s898_s4 = inlined_call_operand.vmem [shape: f32[16,1], index: 4, kind: input, shape index: {}]   ;;  %s899_s5 = inlined_call_operand.hbm [shape: f32[2,16,128], index: 5, kind: output, shape index: {}]  }
   0x1   :  { %12 = vsyncpa [#allocation3 + $0x1], 0  ;;  %s759_s18 = smov 0   ;;  %s761_s19 = smov 0  }
   0x2   :  { %s763_s20 = smov 0   ;;  %s765_s21 = smov 0  }
   0x3   :  { %s767_s22 = smov 0   ;;  %s769_s23 = smov 0  }
   0x4 LB: > { %s529_s24 = sadd.s32 4294967295, %s720_s23   ;;  %s530_s25 = sadd.s32 4294967294, %s720_s23   ;;  %s720_s23 = sphi %s769_s23, %s18_s23   ;;  %s716_s22 = sphi %s767_s22, %s906_s22   ;;  %s712_s21 = sphi %s765_s21, %s905_s21   ;;  %s708_s20 = sphi %s763_s20, %s904_s20   ;;  %s704_s19 = sphi %s761_s19, %s903_s19   ;;  %s700_s18 = sphi %s759_s18, %s902_s18  }
   0x5   : > { %s30_s26 = sadd.s32 1, %s716_s22  ;;  %s151_s27 = sadd.s32 1, %s708_s20 }
   0x6   : > { %p32_p0 = scmp.ge.s32.totalorder %s30_s26, 2  ;;  %p161_p1 = scmp.ne.s32.totalorder %s708_s20, %s704_s19 }
   0x7   : > { %p162_p2 = scmp.eq.s32.totalorder %s529_s24, 1  ;;  %p167_p3 = scmp.ne.s32.totalorder %s704_s19, %s700_s18 }
   0x8   : > { %s908_s26 = smov (%p32_p0, %s30_s26), 0  ;;  %p168_p5 = scmp.eq.s32.totalorder %s530_s25, 1 }
   0x9   : > { %p799_p4 = por %p162_p2, %p161_p1  ;;  %s146_s29 = ssub.s32 %s716_s22, %s908_s26 }
   0xa   : > { %p533_p6 = scmp.ge.s32.totalorder %s720_s23, 1  ;;  %p149_p7 = scmp.eq.s32.totalorder %s146_s29, 0 }
   0xb   : > { %p806_p8 = por %p168_p5, %p167_p3  ;;  %p209_p9 = scmp.lt.s32.totalorder %s720_s23, 3 }
   0xc   : > { %s812_s6 = scalar_select %p149_p7, %s708_s20, %s151_s27  }
   0xd   : > { %p210_p10 = pnand %p533_p6, %p209_p9 }
   0xe   : > { %p240_p11 = scmp.lt.s32.totalorder (!%p210_p10), %s712_s21, 1  ;;  %v722_v0 = vmov (!%p210_p10), 0.0|0.0   ;;  %vm723_vm0 = vmmov (!%p210_p10), 0   ;;  %v724_v1 = vmov (!%p210_p10), 0.0   ;;  %v251_v2 = vld [vmem:[%s896_s2] sm:$0xff] (!%p210_p10)  ;;  %v725_v3 = vmov (!%p210_p10), 0  }
   0xf   : > { %213 = sbr.rel (%p210_p10) target bundleno = 499 (0x1f3), region = 40  ;;  %571 = vmatprep.subr.bf16.mxu0 (!%p210_p10), %v722_v0  ;;  %563 = vmatprep.mubr.msk.f32.mxu0 (!%p210_p10), %vm723_vm0, %v724_v1  ;;  %v257_v4 = vld [vmem:[%s898_s4] sm:$0xff] (!%p210_p10)  ;;  %vm273_vm1 = vcmask (!%p210_p10), 261120   ;;  %vm352_vm2 = vcmask (!%p210_p10), 64512   ;;  %v258_v13 = vld [vmem:[%s898_s4 + $0x8] sm:$0xff] (!%p210_p10)  ;;  %s546_s13 = sshll.u32 (!%p210_p10), %s712_s21, 8 }
  0x10   : > { %638 = vset.pattern.permute.xlu0 (!%p210_p10), %v725_v3  ;;  %639 = vset.pattern.permute.xlu1 (!%p210_p10), %v725_v3  ;;  %v248_v11 = vld [vmem:[%s895_s1] sm:$0xff] (!%p210_p10)  ;;  %v250_v23 = vld [vmem:[%s897_s3 + $0x8] sm:$0xff] (!%p210_p10)  ;;  %s846_s16 = scalar_lea.hbm (!%p210_p10), %s899_s5, %s546_s13  ;;  %s726_s24 = smov (!%p210_p10), [#allocation2]  }
  0x11   : > { %254 = vperm.xlu0 (!%p210_p10), %638, %v251_v2   ;;  %v249_v12 = vld [vmem:[%s897_s3] sm:$0xff] (!%p210_p10)  ;;  %266 = vperm.xlu1 (!%p210_p10), %639, %v258_v13   ;;  %s646_s25 = sshll.u32 (!%p210_p10), %s726_s24, 4  ;;  %s647_s25 = int_to_ptr.vmem [resolvable:$false] %s646_s25 }
  0x12   : > { %568 = vmatprep.mubr.msk.f32.mxu1 (!%p210_p10), %vm352_vm2, %v249_v12  ;;  %s648_s27 = scalar_lea.vmem (!%p210_p10), %s647_s25, 512 }
  0x15   : > { %261 = vperm.xlu0 (!%p210_p10), %638, %v257_v4  }
  0x16   : > { %s241_s9 = scalar_select %p240_p11, %s712_s21, 1 }
  0x18   : > { %s545_s10 = sshll.u32 %s241_s9, 5  ;;  %s237_s9 = sand.u32 1, %s704_s19  }
  0x19   : > { %s247_s15 = scalar_lea.vmem %s894_s0, %s545_s10  ;;  %s534_s10 = sshll.u32 %s237_s9, 4 }
  0x1a   : > { %v269_v5 = vld [vmem:[%s247_s15] sm:$0xff]  ;;  %v270_v6 = vld [vmem:[%s247_s15 + $0x8] sm:$0xff]  ;;  %v271_v7 = vld [vmem:[%s247_s15 + $0x10] sm:$0xff]  ;;  %s239_s11 = scalar_lea.vmem [#allocation2], %s534_s10  ;;  %s848_s17 = scalar_lea.sflag [#allocation3], %s237_s9 }
  0x1b   : > { %v572_v8 = vpack.c.bf16 %v270_v6, %v269_v5  ;;  %v272_v9 = vld [vmem:[%s247_s15 + $0x18] sm:$0xff]  ;;  %s451_s12 = sshll.u32 %s239_s11, 4  ;;  %s841_s12 = int_to_ptr.vmem [resolvable:$true] %s451_s12 }
  0x1c   : > { %v575_v10 = vpack.c.bf16 %v272_v9, %v271_v7  ;;  %s642_s21 = scalar_lea.vmem %s841_s12, 256  ;;  %p649_p1 = scmp.lt.s32.totalorder %s841_s12, %s647_s25 }
  0x1d   : > { %573 = vmatpush3.bf16.msra.mxu0 %v572_v8  ;;  %p643_p12 = scmp.ne.s32.totalorder %s841_s12, %s642_s21  ;;  %p650_p2 = scmp.lt.s32.totalorder %s648_s27, %s642_s21 }
  0x1e   : > { %574 = vmatprep.subr.bf16.mxu0 %v722_v0 }
  0x1f   : > { %p644_p13 = pnand %p643_p12, %p799_p4  ;;  %p651_p3 = por %p650_p2, %p649_p1 }
  0x21   : > { %576 = vmatpush3.bf16.msra.mxu0 %v575_v10  ;;  %p645_p0 = pneg %p644_p13 }
  0x23   : > { %p652_p5 = pnand %p651_p3, %p645_p0 }
  0x24   : > { %564 = vmatmul.mubr.msk.f32.vlgmr.msra.gmra.mrb[0].mxu0 %vm273_vm1, %v248_v11 }
  0x90   : > { %v255_v14 = vpop.permute.xlu0 %254  ;;  %v267_v24 = vpop.permute.xlu1 %266 }
  0x94   : > { %v262_v26 = vpop.permute.xlu0 %261 }
  0xf7   : > { %v343_v15 = vpop.f32.mrb[0].mxu0 }
  0xf8   : > { %v344_v16 = vadd.f32 %v343_v15, %v255_v14  ;;  %v565_v17 = vpop.f32.mrb[1].mxu0 }
  0xfa   : > { %v348_v18 = vmul.f32 0.70710677, %v344_v16  ;;  %v347_v20 = vmul.f32 0.5, %v344_v16 }
  0xfc   : > { %640 = verf.f32 %v348_v18 }
 0x106   : > { %v641_v19 = vpop.eup %640 }
 0x107   : > { %v350_v21 = vadd.f32 1.0, %v641_v19 }
 0x109   : > { %v351_v22 = vmul.f32 %v350_v21, %v347_v20 }
 0x10b   : > { %566 = vmatprep.subr.mxu1 %v351_v22 }
 0x10c   : > { %567 = vmatpush3.msra.mxu1 %v351_v22 }
 0x10d   : > { %569 = vmatmul.mubr.msk.f32.vlgmr.msra.gmra.mrb[0].mxu1 %vm352_vm2, %v250_v23 }
 0x1e0   : > { %v570_v25 = vpop.f32.mrb[0].mxu1 }
 0x1e1   : > { %v431_v27 = vadd.f32 %v570_v25, %v267_v24  ;;  %v425_v28 = vpop.f32.mrb[1].mxu1 }
 0x1e2   : > { %v426_v29 = vadd.f32 %v425_v28, %v262_v26 }
 0x1e3   : > { %435 = vst [vmem:[%s239_s11 + $0x8] sm:$0xff] %v431_v27 }
 0x1e4   : > { %434 = vst [vmem:[%s239_s11] sm:$0xff] %v426_v29 }
 0x1e5   : > { %655 = shalt.err (!%p652_p5)
}
 0x1e6   : > { %s656_s29 = scalar_lea.hbm %s846_s16, 256  ;;  %s660_s9 = scalar_lea.hbm %s899_s5, 512 }
 0x1e7   : > { %p657_p6 = scmp.ne.s32.totalorder %s846_s16, %s656_s29  ;;  %p661_p10 = scmp.lt.u32.totalorder %s846_s16, %s899_s5 }
 0x1e8   : > { %p662_p11 = scmp.lt.u32.totalorder %s660_s9, %s656_s29  ;;  %p664_p13 = scmp.lt.u32.totalorder %s656_s29, %s846_s16 }
 0x1e9   : > { %p658_p7 = pnand %p657_p6, %p799_p4 }
 0x1ea   : > { %p663_p12 = por %p662_p11, %p661_p10 }
 0x1eb   : > { %p659_p9 = pneg %p658_p7 }
 0x1ec   : > { %p665_p0 = por %p664_p13, %p663_p12 }
 0x1ee   : > { %p666_p1 = pnand %p665_p0, %p659_p9 }
 0x1f0   : > { %669 = shalt.err (!%p666_p1)
}
 0x1f1   : > { %s727_s13 = smov 128   ;;  %s728_s14 = smov 8  }
 0x1f2   : > { %577 = dma.vmem_to_hbm [thread:$0]  (%p799_p4), %s841_s12, 256, %s846_s16, %s848_s17, %s727_s13, %s727_s13, %s728_s14  }
 0x1f3 PF: > { %p583_p2 = scmp.ge.s32.totalorder %s720_s23, 2  ;;  %s466_s15 = sand.u32 1, %s700_s18  }
 0x1f4   : > { %s467_s21 = scalar_lea.sflag [#allocation3], %s466_s15 }
 0x1f5   : > { %p580_p3 = pnand %p583_p2, %p806_p8 }
 0x1f7   : > { %695 = dma.done.wait (!%p580_p3), %s467_s21, 256  }
 0x1f8   : > { %697 = vsyncadd (!%p580_p3), %s467_s21, 4294967040  ;;  %s18_s23 = sadd.s32 1, %s720_s23   ;;  %s902_s18 = smov %s704_s19 }
 0x1f9   : > { %p15_p5 = scmp.ge.s32.totalorder %s18_s23, 4   ;;  %s903_s19 = smov %s708_s20 }
 0x1fa   : > { %s904_s20 = smov %s812_s6  ;;  %s905_s21 = smov %s716_s22 }
 0x1fb   : > { %s906_s22 = smov %s908_s26  ;;  %17 = sbr.rel (!%p15_p5) target bundleno = 4 (0x4), region = 75 }
 0x202   :  { %472 = vsyncpa [#allocation3], 1 }
 0x203   :  { %474 = vsyncpa [#allocation3 + $0x1], 1 }

</bundles_post_ra>
